<compile_context>
chip_gen: v6e
topology: v6e:2x2x1
jax: 0.10.0
libtpu: 0.0.40
codegen_flags: <defaults>
</compile_context>

<pallas_src>
import functools

import jax
import jax.numpy as jnp
from jax import lax
from jax.experimental import pallas as pl
from jax.experimental.pallas import tpu as pltpu


def _round_up(x, m):
    return ((x + m - 1) // m) * m


def _pcen_kernel(x_ref, w_ref, alpha_ref, delta_ref, oor_ref, dp_ref,
                 o_ref, acc_ref, ema_ref, *, floor):
    """x_ref/o_ref: (T_TILE, N_TILE); params: (1, N_TILE);
    acc_ref: (1, N_TILE) EMA carry across T tiles; ema_ref: (T_TILE, N_TILE)."""
    t_blk = pl.program_id(1)
    t_tile = x_ref.shape[0]
    UNROLL = 8  # t_tile is always a multiple of 8 (enforced by the wrapper)

    w = w_ref[...]                       # (1, N_TILE), already clamped
    one_minus_w = 1.0 - w                # hoisted out of the recurrence loop

    # Initialize the EMA carry from the very first timestep of the sequence
    # only on the first T tile; later T tiles continue from the carried state.
    @pl.when(t_blk == 0)
    def _():
        acc_ref[...] = x_ref[0:1, :].astype(jnp.float32)

    acc0 = acc_ref[...]

    # ---- Pass 1: serial EMA recurrence (VALU only, vreg carry, 8x unroll) ---
    def body(j, acc):
        base = pl.multiple_of(j * UNROLL, UNROLL)
        for k in range(UNROLL):
            xt = x_ref[pl.ds(base + k, 1), :].astype(jnp.float32)
            acc = w * xt + one_minus_w * acc
            ema_ref[pl.ds(base + k, 1), :] = acc
        return acc

    acc_final = lax.fori_loop(0, t_tile // UNROLL, body, acc0)
    acc_ref[...] = acc_final             # carry state to the next T tile

    # ---- Pass 2: vectorized output over the whole tile, one full store ------
    x = x_ref[...].astype(jnp.float32)
    ema = ema_ref[...]
    alpha = alpha_ref[...]
    delta = delta_ref[...]
    oor = oor_ref[...]
    dp = dp_ref[...]                     # delta ** (1/root), precomputed

    # x / (floor+ema)**alpha  ==  x * exp(-alpha * log(floor+ema))
    inner = x * jnp.exp(-alpha * jnp.log(floor + ema)) + delta
    out = jnp.exp(oor * jnp.log(inner)) - dp
    o_ref[...] = out.astype(o_ref.dtype)


def pcen_forward(x, x_length, params, *, floor=1e-12, t_tile=512, n_tile=512):
    """x: (B, C, T) float32. Returns (output (B, C, T), x_length)."""
    B, C, T = x.shape
    N = B * C

    # ---- parameter preprocessing (glue) -------------------------------------
    alpha = jnp.minimum(params["alpha"].astype(jnp.float32), 1.0)      # (C,)
    root = jnp.maximum(params["root"].astype(jnp.float32), 1.0)        # (C,)
    one_over_root = 1.0 / root                                         # (C,)
    delta = params["delta"].astype(jnp.float32)                        # (C,)
    w = jnp.clip(params["ema_weights"].astype(jnp.float32), 0.0, 1.0)  # (C,)
    delta_pow = delta ** one_over_root                                 # (C,)

    # ---- layout: (B, C, T) -> (T, N) with N = B*C (lane index = b*C + c) ----
    x_tn = jnp.transpose(x, (2, 0, 1)).reshape(T, N)
    # TODO(synk): if adjacent model ops can consume/produce the (T, B*C)
    # layout, these transposes (full HBM passes) can be elided.

    # ---- tiling: lane-dense N (multiple of 128), T multiple of 8 ------------
    n_tile = _round_up(max(n_tile, 1), 128)
    t_tile = _round_up(max(t_tile, 1), 8)
    n_tile_eff = min(n_tile, _round_up(N, 128))
    t_tile_eff = min(t_tile, _round_up(T, 8))
    N_pad = _round_up(N, n_tile_eff)
    T_pad = _round_up(T, t_tile_eff)

    x_p = jnp.pad(x_tn, ((0, T_pad - T), (0, N_pad - N)))

    def tile_param(p, pad_value):
        full = jnp.tile(p, B)                                   # value = p[c]
        full = jnp.pad(full, (0, N_pad - N), constant_values=pad_value)
        return full.reshape(1, N_pad)

    # Pad params with benign values so padded lanes stay finite (sliced away).
    w_t = tile_param(w, 1.0)
    a_t = tile_param(alpha, 1.0)
    d_t = tile_param(delta, 1.0)
    r_t = tile_param(one_over_root, 1.0)
    dp_t = tile_param(delta_pow, 1.0)

    grid = (N_pad // n_tile_eff, T_pad // t_tile_eff)
    param_spec = pl.BlockSpec((1, n_tile_eff), lambda n, t: (0, n))

    out_p = pl.pallas_call(
        functools.partial(_pcen_kernel, floor=float(floor)),
        out_shape=jax.ShapeDtypeStruct((T_pad, N_pad), x.dtype),
        grid=grid,
        in_specs=[
            pl.BlockSpec((t_tile_eff, n_tile_eff), lambda n, t: (t, n)),
            param_spec, param_spec, param_spec, param_spec, param_spec,
        ],
        out_specs=pl.BlockSpec((t_tile_eff, n_tile_eff), lambda n, t: (t, n)),
        scratch_shapes=[
            pltpu.VMEM((1, n_tile_eff), jnp.float32),            # EMA carry
            pltpu.VMEM((t_tile_eff, n_tile_eff), jnp.float32),   # EMA sequence
        ],
        compiler_params=pltpu.CompilerParams(
            dimension_semantics=("parallel", "arbitrary"),
            vmem_limit_bytes=32 * 1024 * 1024,
        ),
    )(x_p, w_t, a_t, d_t, r_t, dp_t)

    out = out_p[:T, :N].reshape(T, B, C).transpose(1, 2, 0)      # (B, C, T)
    # TODO(synk): normalize_batch (normalize='none') is an external helper not
    # defined in the module source; treated as identity here. x_length is only
    # passed through, matching the PyTorch forward.
    return out, x_length


def _pcen_reference(x, params, floor=1e-12):
    """Pure-JAX reference mirroring the PyTorch forward, for verification."""
    alpha = jnp.minimum(params["alpha"], 1.0)
    root = jnp.maximum(params["root"], 1.0)
    one_over_root = 1.0 / root
    delta = params["delta"]
    w = jnp.clip(params["ema_weights"], 0.0, 1.0)

    init = x[:, :, 0]                                            # (B, C)

    def step(acc, xt):                                           # xt: (B, C)
        acc = w * xt + (1.0 - w) * acc
        return acc, acc

    _, ema = lax.scan(step, init, jnp.transpose(x, (2, 0, 1)))
    ema = jnp.transpose(ema, (1, 2, 0))                          # (B, C, T)

    a = alpha[None, :, None]
    d = delta[None, :, None]
    r = one_over_root[None, :, None]
    return (x / (floor + ema) ** a + d) ** r - d ** r


if __name__ == "__main__":
    key = jax.random.PRNGKey(0)
    B, C, T = 2, 4, 16                                           # (batch, channels, time)
    x = jax.random.uniform(key, (B, C, T), dtype=jnp.float32)
    x_length = jnp.full((B,), T, dtype=jnp.int32)

    # Deterministic parameter init, matching the module's __init__ defaults.
    params = {
        "alpha": jnp.ones((C,), jnp.float32) * 0.96,
        "delta": jnp.ones((C,), jnp.float32) * 2.0,
        "root": jnp.ones((C,), jnp.float32) * 2.0,
        "ema_weights": jnp.ones((C,), jnp.float32) * 0.04,       # per-channel (sPCEN)
    }

    # Small tiles here so the test exercises multiple T tiles (EMA carried
    # across the trailing "arbitrary" grid axis) plus N padding to 128 lanes.
    out, out_len = pcen_forward(x, x_length, params, t_tile=8, n_tile=128)
    out = jax.block_until_ready(out)

    ref = _pcen_reference(x, params)
    assert out.shape == (B, C, T), out.shape
    assert jnp.allclose(out, ref, atol=2e-5, rtol=2e-5), \
        float(jnp.max(jnp.abs(out - ref)))

    print("KERNEL_OK")
</pallas_src>

<mosaic_0001>
module attributes {stable_mosaic.version = 11 : i64} {
  func.func @_pcen_kernel(%arg0: i32, %arg1: i32, %arg2: memref<8x128xf32, #tpu.memory_space<vmem>>, %arg3: memref<1x128xf32, #tpu.memory_space<vmem>>, %arg4: memref<1x128xf32, #tpu.memory_space<vmem>>, %arg5: memref<1x128xf32, #tpu.memory_space<vmem>>, %arg6: memref<1x128xf32, #tpu.memory_space<vmem>>, %arg7: memref<1x128xf32, #tpu.memory_space<vmem>>, %arg8: memref<8x128xf32, #tpu.memory_space<vmem>>, %arg9: memref<1x128xf32, #tpu.memory_space<vmem>>, %arg10: memref<8x128xf32, #tpu.memory_space<vmem>>) attributes {dimension_semantics = [#tpu.dimension_semantics<parallel>, #tpu.dimension_semantics<arbitrary>], iteration_bounds = array<i64: 1, 2>, scalar_prefetch = 0 : i64, scratch_operands = 2 : i64, tpu.core_type = #tpu.core_type<tc>, window_params = [{transform_indices = @transform_0, window_bounds = array<i64: 8, 128>}, {transform_indices = @transform_1, window_bounds = array<i64: 1, 128>}, {transform_indices = @transform_2, window_bounds = array<i64: 1, 128>}, {transform_indices = @transform_3, window_bounds = array<i64: 1, 128>}, {transform_indices = @transform_4, window_bounds = array<i64: 1, 128>}, {transform_indices = @transform_5, window_bounds = array<i64: 1, 128>}, {transform_indices = @transform_6, window_bounds = array<i64: 8, 128>}]} {
    %c0 = arith.constant 0 : index
    %c0_0 = arith.constant 0 : index
    %0 = vector.load %arg3[%c0, %c0_0] : memref<1x128xf32, #tpu.memory_space<vmem>>, vector<1x128xf32>
    %cst = arith.constant 1.000000e+00 : f32
    %1 = vector.broadcast %cst : f32 to vector<1x128xf32>
    %2 = arith.subf %1, %0 : vector<1x128xf32>
    %c0_i32 = arith.constant 0 : i32
    %3 = arith.cmpi eq, %arg1, %c0_i32 : i32
    %4 = arith.extui %3 : i1 to i32
    %c0_i32_1 = arith.constant 0 : i32
    %5 = arith.cmpi ne, %4, %c0_i32_1 : i32
    scf.if %5 {
      %c0_49 = arith.constant 0 : index
      %c0_50 = arith.constant 0 : index
      %106 = vector.load %arg2[%c0_49, %c0_50] : memref<8x128xf32, #tpu.memory_space<vmem>>, vector<1x128xf32>
      %c0_51 = arith.constant 0 : index
      %c0_52 = arith.constant 0 : index
      %107 = vector.load %arg9[%c0_51, %c0_52] : memref<1x128xf32, #tpu.memory_space<vmem>>, vector<1x128xf32>
      tpu.vector_store %arg9[%c0_51, %c0_52], %106 {strides = array<i32>} : memref<1x128xf32, #tpu.memory_space<vmem>>, vector<1x128xf32>,
    } else {
    }
    %c0_2 = arith.constant 0 : index
    %c0_3 = arith.constant 0 : index
    %6 = vector.load %arg9[%c0_2, %c0_3] : memref<1x128xf32, #tpu.memory_space<vmem>>, vector<1x128xf32>
    %c0_i32_4 = arith.constant 0 : i32
    %c8_i32 = arith.constant 8 : i32
    %7 = arith.muli %c0_i32_4, %c8_i32 : i32
    %8 = tpu.assume_multiple %7, 8 : i32
    %c0_i32_5 = arith.constant 0 : i32
    %9 = arith.addi %8, %c0_i32_5 : i32
    %10 = arith.index_cast %9 : i32 to index
    %c0_6 = arith.constant 0 : index
    %11 = vector.load %arg2[%10, %c0_6] : memref<8x128xf32, #tpu.memory_space<vmem>>, vector<1x128xf32>
    %12 = arith.mulf %0, %11 : vector<1x128xf32>
    %13 = arith.mulf %2, %6 : vector<1x128xf32>
    %14 = arith.addf %12, %13 : vector<1x128xf32>
    %c0_i32_7 = arith.constant 0 : i32
    %15 = arith.addi %8, %c0_i32_7 : i32
    %16 = arith.index_cast %15 : i32 to index
    %c0_8 = arith.constant 0 : index
    %17 = vector.load %arg10[%16, %c0_8] : memref<8x128xf32, #tpu.memory_space<vmem>>, vector<1x128xf32>
    tpu.vector_store %arg10[%16, %c0_8], %14 {strides = array<i32>} : memref<8x128xf32, #tpu.memory_space<vmem>>, vector<1x128xf32>,
    %c1_i32 = arith.constant 1 : i32
    %18 = arith.addi %8, %c1_i32 : i32
    %19 = arith.index_cast %18 : i32 to index
    %c0_9 = arith.constant 0 : index
    %20 = vector.load %arg2[%19, %c0_9] : memref<8x128xf32, #tpu.memory_space<vmem>>, vector<1x128xf32>
    %21 = arith.mulf %0, %20 : vector<1x128xf32>
    %22 = arith.mulf %2, %14 : vector<1x128xf32>
    %23 = arith.addf %21, %22 : vector<1x128xf32>
    %c1_i32_10 = arith.constant 1 : i32
    %24 = arith.addi %8, %c1_i32_10 : i32
    %25 = arith.index_cast %24 : i32 to index
    %c0_11 = arith.constant 0 : index
    %26 = vector.load %arg10[%25, %c0_11] : memref<8x128xf32, #tpu.memory_space<vmem>>, vector<1x128xf32>
    tpu.vector_store %arg10[%25, %c0_11], %23 {strides = array<i32>} : memref<8x128xf32, #tpu.memory_space<vmem>>, vector<1x128xf32>,
    %c2_i32 = arith.constant 2 : i32
    %27 = arith.addi %8, %c2_i32 : i32
    %28 = arith.index_cast %27 : i32 to index
    %c0_12 = arith.constant 0 : index
    %29 = vector.load %arg2[%28, %c0_12] : memref<8x128xf32, #tpu.memory_space<vmem>>, vector<1x128xf32>
    %30 = arith.mulf %0, %29 : vector<1x128xf32>
    %31 = arith.mulf %2, %23 : vector<1x128xf32>
    %32 = arith.addf %30, %31 : vector<1x128xf32>
    %c2_i32_13 = arith.constant 2 : i32
    %33 = arith.addi %8, %c2_i32_13 : i32
    %34 = arith.index_cast %33 : i32 to index
    %c0_14 = arith.constant 0 : index
    %35 = vector.load %arg10[%34, %c0_14] : memref<8x128xf32, #tpu.memory_space<vmem>>, vector<1x128xf32>
    tpu.vector_store %arg10[%34, %c0_14], %32 {strides = array<i32>} : memref<8x128xf32, #tpu.memory_space<vmem>>, vector<1x128xf32>,
    %c3_i32 = arith.constant 3 : i32
    %36 = arith.addi %8, %c3_i32 : i32
    %37 = arith.index_cast %36 : i32 to index
    %c0_15 = arith.constant 0 : index
    %38 = vector.load %arg2[%37, %c0_15] : memref<8x128xf32, #tpu.memory_space<vmem>>, vector<1x128xf32>
    %39 = arith.mulf %0, %38 : vector<1x128xf32>
    %40 = arith.mulf %2, %32 : vector<1x128xf32>
    %41 = arith.addf %39, %40 : vector<1x128xf32>
    %c3_i32_16 = arith.constant 3 : i32
    %42 = arith.addi %8, %c3_i32_16 : i32
    %43 = arith.index_cast %42 : i32 to index
    %c0_17 = arith.constant 0 : index
    %44 = vector.load %arg10[%43, %c0_17] : memref<8x128xf32, #tpu.memory_space<vmem>>, vector<1x128xf32>
    tpu.vector_store %arg10[%43, %c0_17], %41 {strides = array<i32>} : memref<8x128xf32, #tpu.memory_space<vmem>>, vector<1x128xf32>,
    %c4_i32 = arith.constant 4 : i32
    %45 = arith.addi %8, %c4_i32 : i32
    %46 = arith.index_cast %45 : i32 to index
    %c0_18 = arith.constant 0 : index
    %47 = vector.load %arg2[%46, %c0_18] : memref<8x128xf32, #tpu.memory_space<vmem>>, vector<1x128xf32>
    %48 = arith.mulf %0, %47 : vector<1x128xf32>
    %49 = arith.mulf %2, %41 : vector<1x128xf32>
    %50 = arith.addf %48, %49 : vector<1x128xf32>
    %c4_i32_19 = arith.constant 4 : i32
    %51 = arith.addi %8, %c4_i32_19 : i32
    %52 = arith.index_cast %51 : i32 to index
    %c0_20 = arith.constant 0 : index
    %53 = vector.load %arg10[%52, %c0_20] : memref<8x128xf32, #tpu.memory_space<vmem>>, vector<1x128xf32>
    tpu.vector_store %arg10[%52, %c0_20], %50 {strides = array<i32>} : memref<8x128xf32, #tpu.memory_space<vmem>>, vector<1x128xf32>,
    %c5_i32 = arith.constant 5 : i32
    %54 = arith.addi %8, %c5_i32 : i32
    %55 = arith.index_cast %54 : i32 to index
    %c0_21 = arith.constant 0 : index
    %56 = vector.load %arg2[%55, %c0_21] : memref<8x128xf32, #tpu.memory_space<vmem>>, vector<1x128xf32>
    %57 = arith.mulf %0, %56 : vector<1x128xf32>
    %58 = arith.mulf %2, %50 : vector<1x128xf32>
    %59 = arith.addf %57, %58 : vector<1x128xf32>
    %c5_i32_22 = arith.constant 5 : i32
    %60 = arith.addi %8, %c5_i32_22 : i32
    %61 = arith.index_cast %60 : i32 to index
    %c0_23 = arith.constant 0 : index
    %62 = vector.load %arg10[%61, %c0_23] : memref<8x128xf32, #tpu.memory_space<vmem>>, vector<1x128xf32>
    tpu.vector_store %arg10[%61, %c0_23], %59 {strides = array<i32>} : memref<8x128xf32, #tpu.memory_space<vmem>>, vector<1x128xf32>,
    %c6_i32 = arith.constant 6 : i32
    %63 = arith.addi %8, %c6_i32 : i32
    %64 = arith.index_cast %63 : i32 to index
    %c0_24 = arith.constant 0 : index
    %65 = vector.load %arg2[%64, %c0_24] : memref<8x128xf32, #tpu.memory_space<vmem>>, vector<1x128xf32>
    %66 = arith.mulf %0, %65 : vector<1x128xf32>
    %67 = arith.mulf %2, %59 : vector<1x128xf32>
    %68 = arith.addf %66, %67 : vector<1x128xf32>
    %c6_i32_25 = arith.constant 6 : i32
    %69 = arith.addi %8, %c6_i32_25 : i32
    %70 = arith.index_cast %69 : i32 to index
    %c0_26 = arith.constant 0 : index
    %71 = vector.load %arg10[%70, %c0_26] : memref<8x128xf32, #tpu.memory_space<vmem>>, vector<1x128xf32>
    tpu.vector_store %arg10[%70, %c0_26], %68 {strides = array<i32>} : memref<8x128xf32, #tpu.memory_space<vmem>>, vector<1x128xf32>,
    %c7_i32 = arith.constant 7 : i32
    %72 = arith.addi %8, %c7_i32 : i32
    %73 = arith.index_cast %72 : i32 to index
    %c0_27 = arith.constant 0 : index
    %74 = vector.load %arg2[%73, %c0_27] : memref<8x128xf32, #tpu.memory_space<vmem>>, vector<1x128xf32>
    %75 = arith.mulf %0, %74 : vector<1x128xf32>
    %76 = arith.mulf %2, %68 : vector<1x128xf32>
    %77 = arith.addf %75, %76 : vector<1x128xf32>
    %c7_i32_28 = arith.constant 7 : i32
    %78 = arith.addi %8, %c7_i32_28 : i32
    %79 = arith.index_cast %78 : i32 to index
    %c0_29 = arith.constant 0 : index
    %80 = vector.load %arg10[%79, %c0_29] : memref<8x128xf32, #tpu.memory_space<vmem>>, vector<1x128xf32>
    tpu.vector_store %arg10[%79, %c0_29], %77 {strides = array<i32>} : memref<8x128xf32, #tpu.memory_space<vmem>>, vector<1x128xf32>,
    %c1_i32_30 = arith.constant 1 : i32
    %c0_31 = arith.constant 0 : index
    %c0_32 = arith.constant 0 : index
    %81 = vector.load %arg9[%c0_31, %c0_32] : memref<1x128xf32, #tpu.memory_space<vmem>>, vector<1x128xf32>
    tpu.vector_store %arg9[%c0_31, %c0_32], %77 {strides = array<i32>} : memref<1x128xf32, #tpu.memory_space<vmem>>, vector<1x128xf32>,
    %c0_33 = arith.constant 0 : index
    %c0_34 = arith.constant 0 : index
    %82 = vector.load %arg2[%c0_33, %c0_34] : memref<8x128xf32, #tpu.memory_space<vmem>>, vector<8x128xf32>
    %c0_35 = arith.constant 0 : index
    %c0_36 = arith.constant 0 : index
    %83 = vector.load %arg10[%c0_35, %c0_36] : memref<8x128xf32, #tpu.memory_space<vmem>>, vector<8x128xf32>
    %c0_37 = arith.constant 0 : index
    %c0_38 = arith.constant 0 : index
    %84 = vector.load %arg4[%c0_37, %c0_38] : memref<1x128xf32, #tpu.memory_space<vmem>>, vector<1x128xf32>
    %c0_39 = arith.constant 0 : index
    %c0_40 = arith.constant 0 : index
    %85 = vector.load %arg5[%c0_39, %c0_40] : memref<1x128xf32, #tpu.memory_space<vmem>>, vector<1x128xf32>
    %c0_41 = arith.constant 0 : index
    %c0_42 = arith.constant 0 : index
    %86 = vector.load %arg6[%c0_41, %c0_42] : memref<1x128xf32, #tpu.memory_space<vmem>>, vector<1x128xf32>
    %c0_43 = arith.constant 0 : index
    %c0_44 = arith.constant 0 : index
    %87 = vector.load %arg7[%c0_43, %c0_44] : memref<1x128xf32, #tpu.memory_space<vmem>>, vector<1x128xf32>
    %cst_45 = arith.constant 0.000000e+00 : f32
    %88 = vector.broadcast %cst_45 : f32 to vector<1x128xf32>
    %89 = arith.subf %88, %84 : vector<1x128xf32>
    %cst_46 = arith.constant 9.99999996E-13 : f32
    %90 = vector.broadcast %cst_46 : f32 to vector<8x128xf32>
    %91 = arith.addf %90, %83 : vector<8x128xf32>
    %92 = math.log %91 : vector<8x128xf32>
    %93 = vector.broadcast %89 : vector<1x128xf32> to vector<8x128xf32>
    %94 = arith.mulf %93, %92 : vector<8x128xf32>
    %95 = math.exp %94 : vector<8x128xf32>
    %96 = arith.mulf %82, %95 : vector<8x128xf32>
    %97 = vector.broadcast %85 : vector<1x128xf32> to vector<8x128xf32>
    %98 = arith.addf %96, %97 : vector<8x128xf32>
    %99 = math.log %98 : vector<8x128xf32>
    %100 = vector.broadcast %86 : vector<1x128xf32> to vector<8x128xf32>
    %101 = arith.mulf %100, %99 : vector<8x128xf32>
    %102 = math.exp %101 : vector<8x128xf32>
    %103 = vector.broadcast %87 : vector<1x128xf32> to vector<8x128xf32>
    %104 = arith.subf %102, %103 : vector<8x128xf32>
    %c0_47 = arith.constant 0 : index
    %c0_48 = arith.constant 0 : index
    %105 = vector.load %arg8[%c0_47, %c0_48] : memref<8x128xf32, #tpu.memory_space<vmem>>, vector<8x128xf32>
    tpu.vector_store %arg8[%c0_47, %c0_48], %104 {strides = array<i32>} : memref<8x128xf32, #tpu.memory_space<vmem>>, vector<8x128xf32>,
    return
  }
  func.func @transform_0(%arg0: i32, %arg1: i32) -> (i32, i32) {
    %c0_i32 = arith.constant 0 : i32
    return %arg1, %arg0 : i32, i32
  }
  func.func @transform_1(%arg0: i32, %arg1: i32) -> (i32, i32) {
    %c0_i32 = arith.constant 0 : i32
    %c0_i32_0 = arith.constant 0 : i32
    return %c0_i32, %arg0 : i32, i32
  }
  func.func @transform_2(%arg0: i32, %arg1: i32) -> (i32, i32) {
    %c0_i32 = arith.constant 0 : i32
    %c0_i32_0 = arith.constant 0 : i32
    return %c0_i32, %arg0 : i32, i32
  }
  func.func @transform_3(%arg0: i32, %arg1: i32) -> (i32, i32) {
    %c0_i32 = arith.constant 0 : i32
    %c0_i32_0 = arith.constant 0 : i32
    return %c0_i32, %arg0 : i32, i32
  }
  func.func @transform_4(%arg0: i32, %arg1: i32) -> (i32, i32) {
    %c0_i32 = arith.constant 0 : i32
    %c0_i32_0 = arith.constant 0 : i32
    return %c0_i32, %arg0 : i32, i32
  }
  func.func @transform_5(%arg0: i32, %arg1: i32) -> (i32, i32) {
    %c0_i32 = arith.constant 0 : i32
    %c0_i32_0 = arith.constant 0 : i32
    return %c0_i32, %arg0 : i32, i32
  }
  func.func @transform_6(%arg0: i32, %arg1: i32) -> (i32, i32) {
    %c0_i32 = arith.constant 0 : i32
    return %arg1, %arg0 : i32, i32
  }
}

</mosaic_0001>

<bundles_post_ra>
// kernel: tpu_custom_call.1
= control target key start
LH: loop header
LB: loop body
LE: loop exit
PB: predicated region body
PF: predicated region fallthrough
CT: control target
= control target key end

     0   :  { %11 = vsyncpa [#allocation5], 0  ;;  %s1052_s0 = inlined_call_operand.hbm [shape: f32[16,128], index: 0, kind: input, shape index: {}]   ;;  %s1053_s1 = inlined_call_operand.vmem [shape: f32[1,128], index: 1, kind: input, shape index: {}]   ;;  %s1054_s2 = inlined_call_operand.vmem [shape: f32[1,128], index: 2, kind: input, shape index: {}]   ;;  %s1055_s3 = inlined_call_operand.vmem [shape: f32[1,128], index: 3, kind: input, shape index: {}]   ;;  %s1056_s4 = inlined_call_operand.vmem [shape: f32[1,128], index: 4, kind: input, shape index: {}]   ;;  %s1057_s5 = inlined_call_operand.vmem [shape: f32[1,128], index: 5, kind: input, shape index: {}]   ;;  %s1058_s6 = inlined_call_operand.hbm [shape: f32[16,128], index: 6, kind: output, shape index: {}]  }
   0x1   :  { %13 = vsyncpa [#allocation5 + $0x1], 0 }
   0x2   :  { %14 = vsyncpa [#allocation6], 0 }
   0x3   :  { %16 = vsyncpa [#allocation6 + $0x1], 0  ;;  %s886_s21 = smov 0   ;;  %s888_s22 = smov 0  }
   0x4   :  { %s890_s23 = smov 0   ;;  %s892_s24 = smov 0  }
   0x5   :  { %s894_s25 = smov 0   ;;  %s896_s26 = smov 0  }
   0x6 LB: > { %s640_s27 = sadd.s32 4294967295, %s847_s26   ;;  %s641_s28 = sadd.s32 4294967294, %s847_s26   ;;  %s847_s26 = sphi %s896_s26, %s22_s26   ;;  %s843_s25 = sphi %s894_s25, %s1070_s25   ;;  %s839_s24 = sphi %s892_s24, %s1069_s24   ;;  %s835_s23 = sphi %s890_s23, %s1068_s23   ;;  %s831_s22 = sphi %s888_s22, %s1067_s22   ;;  %s827_s21 = sphi %s886_s21, %s1066_s21  }
   0x7   : > { %s31_s29 = sadd.s32 1, %s843_s25  ;;  %s43_s30 = sadd.s32 1, %s835_s23 }
   0x8   : > { %p32_p0 = scmp.ge.s32.totalorder %s31_s29, 2  ;;  %p50_p1 = scmp.ne.s32.totalorder %s835_s23, %s831_s22 }
   0x9   : > { %p51_p2 = scmp.eq.s32.totalorder %s847_s26, 0  ;;  %p56_p3 = scmp.ne.s32.totalorder %s831_s22, %s827_s21 }
   0xa   : > { %s1072_s29 = smov (%p32_p0, %s31_s29), 0  ;;  %p57_p5 = scmp.eq.s32.totalorder %s640_s27, 0 }
   0xb   : > { %p927_p4 = por %p51_p2, %p50_p1  ;;  %s38_s8 = ssub.s32 %s843_s25, %s1072_s29 }
   0xc   : > { %p212_p6 = scmp.eq.s32.totalorder %s640_s27, 1  ;;  %p41_p7 = scmp.eq.s32.totalorder %s38_s8, 0 }
   0xd   : > { %p933_p8 = por %p57_p5, %p56_p3  ;;  %p218_p10 = scmp.eq.s32.totalorder %s641_s28, 1 }
   0xe   : > { %p937_p9 = por %p212_p6, %p50_p1  ;;  %p681_p13 = scmp.lt.s32.totalorder %s847_s26, 2 }
   0xf   : > { %s942_s11 = scalar_select %p41_p7, %s835_s23, %s43_s30  }
  0x10   : > { %p944_p11 = por %p218_p10, %p56_p3  ;;  %s268_s13 = sand.u32 1, %s835_s23  }
  0x11   : > { %s649_s14 = sshll.u32 %s268_s13, 3  ;;  %s650_s15 = sshll.u32 %s843_s25, 7 }
  0x12   : > { %s1062_s12 = scalar_select %p944_p11, 1, 0 }
  0x13   : > { %s278_s18 = scalar_lea.hbm %s1052_s0, %s650_s15  ;;  %s272_s19 = scalar_lea.vmem [#allocation4], %s649_s14 }
  0x14   : > { %s280_s20 = sshll.u32 %s272_s19, 4  ;;  %p957_p0 = pnand %p681_p13, %p927_p4  ;;  %s281_s20 = int_to_ptr.vmem [resolvable:$true] %s280_s20 }
  0x15   : > { %p651_p1 = scmp.ge.s32.totalorder %s847_s26, 1  ;;  %p285_p2 = scmp.lt.s32.totalorder %s847_s26, 3 }
  0x16   : > { %s269_s28 = scalar_lea.sflag [#allocation5], %s268_s13  ;;  %p741_p3 = pneg %p957_p0 }
  0x17   : > { %s752_s30 = scalar_lea.vmem %s281_s20, 128  ;;  %s849_s8 = smov [#allocation4]  }
  0x18   : > { %p753_p5 = scmp.ne.s32.totalorder %s281_s20, %s752_s30  ;;  %s757_s15 = sshll.u32 %s849_s8, 4  ;;  %s758_s15 = int_to_ptr.vmem [resolvable:$false] %s757_s15 }
  0x19   : > { %s759_s14 = scalar_lea.vmem %s758_s15, 256  ;;  %p760_p10 = scmp.lt.s32.totalorder %s281_s20, %s758_s15 }
  0x1a   : > { %p755_p6 = pnand %p753_p5, %p741_p3  ;;  %p761_p12 = scmp.lt.s32.totalorder %s759_s14, %s752_s30 }
  0x1c   : > { %p756_p7 = pneg %p755_p6  ;;  %p762_p4 = por %p761_p12, %p760_p10 }
  0x1e   : > { %p763_p13 = pnand %p762_p4, %p756_p7 }
  0x20   : > { %766 = shalt.err (!%p763_p13)
}
  0x21   : > { %676 = dma.hbm_to_vmem [thread:$0]  (!%p957_p0), %s278_s18, 128, %s281_s20, %s269_s28  }
  0x22   : > { %p286_p11 = pnand %p651_p1, %p285_p2 }
  0x23   : > { %s972_s7 = sand.u32 (!%p286_p11), 1, %s831_s22  }
  0x24   : > { %289 = sbr.rel (%p286_p11) target bundleno = 187 (0xbb), region = 44  ;;  %s652_s13 = sshll.u32 (!%p286_p11), %s972_s7, 3 }
  0x25   : > { %s292_s16 = scalar_lea.sflag (!%p286_p11), [#allocation5], %s972_s7  ;;  %s976_s17 = scalar_lea.vmem (!%p286_p11), [#allocation4], %s652_s13 }
  0x29   : > { %818 = dma.done.wait (%p933_p8), %s292_s16, 128  }
  0x2a   : > { %820 = vsyncadd (%p933_p8), %s292_s16, 4294967168  ;;  %v354_v0 = vld [vmem:[%s1053_s1] sm:$0x1]  ;;  %s985_s20 = scalar_lea.vmem [#allocation7], %s652_s13  ;;  %p654_p11 = scmp.ne.s32.totalorder %s839_s24, 0 }
  0x2b   : > { %v355_v1 = vsub.f32 1.0, %v354_v0 }
  0x2c   : > { %359 = sbr.rel (%p654_p11) target bundleno = 51 (0x33), region = 52 }
  0x31   : > { %v360_v2 = vld [vmem:[%s976_s17] sm:$0x1] }
  0x32   : > { %361 = vst [vmem:[#allocation2] sm:$0x1] %v360_v2 }
  0x33 PF: > { %v363_v4 = vld [vmem:[%s976_s17] sm:$0x1]  ;;  %v655_v5 = vld [vmem:[%s976_s17 + $0x1] sm:$0x1]  ;;  %v656_v10 = vld [vmem:[%s976_s17 + $0x2] sm:$0x1]  ;;  %v436_v38 = vlaneseq }
  0x34   : > { %v364_v6 = vmul.f32 %v363_v4, %v354_v0  ;;  %v371_v9 = vmul.f32 %v655_v5, %v354_v0  ;;  %v379_v13 = vmul.f32 %v656_v10, %v354_v0  ;;  %v657_v14 = vld [vmem:[%s976_s17 + $0x3] sm:$0x1]  ;;  %v658_v18 = vld [vmem:[%s976_s17 + $0x4] sm:$0x1]  ;;  %v659_v22 = vld [vmem:[%s976_s17 + $0x5] sm:$0x1] }
  0x35   : > { %v387_v17 = vmul.f32 %v657_v14, %v354_v0  ;;  %v395_v21 = vmul.f32 %v658_v18, %v354_v0  ;;  %v403_v25 = vmul.f32 %v659_v22, %v354_v0  ;;  %v660_v26 = vld [vmem:[%s976_s17 + $0x6] sm:$0x1]  ;;  %v661_v30 = vld [vmem:[%s976_s17 + $0x7] sm:$0x1]  ;;  %v437_v39 = vshrl.u32 %v436_v38, 7  ;;  %s666_s16 = sshll.u32 %s839_s24, 7 }
  0x36   : > { %v411_v29 = vmul.f32 %v660_v26, %v354_v0  ;;  %v419_v33 = vmul.f32 %v661_v30, %v354_v0  ;;  %v427_v40 = vld [vmem:[%s1054_s2] sm:$0x1]  ;;  %v425_v48 = vld [vmem:[%s976_s17] sm:$0xff]  ;;  %s486_s17 = sshll.u32 %s985_s20, 4  ;;  %s484_s9 = scalar_lea.hbm %s1058_s6, %s666_s16  ;;  %s487_s17 = int_to_ptr.vmem [resolvable:$true] %s486_s17 }
  0x37   : > { %v431_v41 = vsub.f32 0.0, %v427_v40  ;;  %v438_v42 = vsub.s32 0, %v437_v39  ;;  %v662_v50 = vld [vmem:[%s1055_s3] ss:$0 sm:$0xff]  ;;  %s472_s27 = scalar_lea.sflag [#allocation6], %s972_s7  ;;  %s767_s28 = scalar_lea.vmem %s487_s17, 128 }
  0x38   : > { %v663_v54 = vld [vmem:[%s1056_s4] ss:$0 sm:$0xff]  ;;  %p768_p8 = scmp.ne.s32.totalorder %s487_s17, %s767_s28  ;;  %s850_s30 = smov [#allocation7]  }
  0x39   : > { %v362_v3 = vld [vmem:[#allocation2] sm:$0x1]  ;;  %v439_v43 = vrot.slane %v431_v41, %v438_v42  ;;  %s771_s8 = sshll.u32 %s850_s30, 4  ;;  %s772_s8 = int_to_ptr.vmem [resolvable:$false] %s771_s8 }
  0x3a   : > { %v365_v7 = vmul.f32 %v362_v3, %v355_v1  ;;  %v664_v58 = vld [vmem:[%s1057_s5] ss:$0 sm:$0xff]  ;;  %p769_p12 = pnand %p768_p8, %p937_p9  ;;  %s773_s15 = scalar_lea.vmem %s772_s8, 256 }
  0x3b   : > { %p774_p1 = scmp.lt.s32.totalorder %s487_s17, %s772_s8  ;;  %p775_p2 = scmp.lt.s32.totalorder %s773_s15, %s767_s28 }
  0x3c   : > { %v366_v8 = vadd.f32 %v365_v7, %v364_v6  ;;  %p770_p0 = pneg %p769_p12 }
  0x3d   : > { %p776_p3 = por %p775_p2, %p774_p1 }
  0x3e   : > { %367 = vst [vmem:[#allocation3] sm:$0x1] %v366_v8  ;;  %v372_v11 = vmul.f32 %v366_v8, %v355_v1 }
  0x3f   : > { %p777_p5 = pnand %p776_p3, %p770_p0 }
  0x40   : > { %v373_v12 = vadd.f32 %v372_v11, %v371_v9 }
  0x42   : > { %375 = vst [vmem:[#allocation3 + $0x1] sm:$0x1] %v373_v12  ;;  %v380_v15 = vmul.f32 %v373_v12, %v355_v1 }
  0x44   : > { %v381_v16 = vadd.f32 %v380_v15, %v379_v13 }
  0x46   : > { %383 = vst [vmem:[#allocation3 + $0x2] sm:$0x1] %v381_v16  ;;  %v388_v19 = vmul.f32 %v381_v16, %v355_v1 }
  0x48   : > { %v389_v20 = vadd.f32 %v388_v19, %v387_v17 }
  0x4a   : > { %391 = vst [vmem:[#allocation3 + $0x3] sm:$0x1] %v389_v20  ;;  %v396_v23 = vmul.f32 %v389_v20, %v355_v1 }
  0x4c   : > { %v397_v24 = vadd.f32 %v396_v23, %v395_v21 }
  0x4e   : > { %399 = vst [vmem:[#allocation3 + $0x4] sm:$0x1] %v397_v24  ;;  %v404_v27 = vmul.f32 %v397_v24, %v355_v1 }
  0x50   : > { %v405_v28 = vadd.f32 %v404_v27, %v403_v25 }
  0x52   : > { %407 = vst [vmem:[#allocation3 + $0x5] sm:$0x1] %v405_v28  ;;  %v412_v31 = vmul.f32 %v405_v28, %v355_v1 }
  0x54   : > { %v413_v32 = vadd.f32 %v412_v31, %v411_v29 }
  0x56   : > { %415 = vst [vmem:[#allocation3 + $0x6] sm:$0x1] %v413_v32  ;;  %v420_v34 = vmul.f32 %v413_v32, %v355_v1 }
  0x58   : > { %v421_v35 = vadd.f32 %v420_v34, %v419_v33 }
  0x5a   : > { %423 = vst [vmem:[#allocation3 + $0x7] sm:$0x1] %v421_v35  ;;  %424 = vst [vmem:[#allocation2] sm:$0x1] %v421_v35 }
  0x61   : > { %v426_v36 = vld [vmem:[#allocation3] sm:$0xff] }
  0x62   : > { %v432_v37 = vadd.f32 1e-12, %v426_v36 }
  0x64   : > { %731 = vlog2.f32 %v432_v37 }
  0x71   : > { %v732_v44 = vpop.eup %731 }
  0x72   : > { %v434_v45 = vmul.f32 0.6931472, %v732_v44 }
  0x74   : > { %v441_v46 = vmul.f32 %v439_v43, %v434_v45 }
  0x76   : > { %v442_v47 = vmul.f32 1.442695, %v441_v46 }
  0x78   : > { %733 = vpow2.f32 %v442_v47 }
  0x85   : > { %v734_v49 = vpop.eup %733 }
  0x86   : > { %v444_v51 = vmul.f32 %v734_v49, %v425_v48 }
  0x88   : > { %v451_v52 = vadd.f32 %v662_v50, %v444_v51 }
  0x8a   : > { %735 = vlog2.f32 %v451_v52 }
  0x97   : > { %v736_v53 = vpop.eup %735 }
  0x98   : > { %v453_v55 = vmul.f32 0.6931472, %v736_v53 }
  0x9a   : > { %v460_v56 = vmul.f32 %v663_v54, %v453_v55 }
  0x9c   : > { %v461_v57 = vmul.f32 1.442695, %v460_v56 }
  0x9e   : > { %737 = vpow2.f32 %v461_v57 }
  0xab   : > { %v738_v59 = vpop.eup %737 }
  0xac   : > { %v469_v60 = vsub.f32 %v738_v59, %v664_v58 }
  0xae   : > { %470 = vst [vmem:[%s985_s20] sm:$0xff] %v469_v60 }
  0xaf   : > { %780 = shalt.err (!%p777_p5)
}
  0xb0   : > { %s781_s24 = scalar_lea.hbm %s484_s9, 128  ;;  %s785_s14 = scalar_lea.hbm %s1058_s6, 256 }
  0xb1   : > { %p782_p6 = scmp.ne.s32.totalorder %s484_s9, %s781_s24  ;;  %p786_p4 = scmp.lt.s32.totalorder %s484_s9, %s1058_s6 }
  0xb2   : > { %p787_p13 = scmp.lt.s32.totalorder %s785_s14, %s781_s24 }
  0xb3   : > { %p783_p7 = pnand %p782_p6, %p937_p9 }
  0xb4   : > { %p788_p11 = por %p787_p13, %p786_p4 }
  0xb5   : > { %p784_p10 = pneg %p783_p7 }
  0xb7   : > { %p789_p8 = pnand %p788_p11, %p784_p10 }
  0xb9   : > { %792 = shalt.err (!%p789_p8)
}
  0xba   : > { %671 = dma.vmem_to_hbm [thread:$0]  (%p937_p9), %s487_s17, 128, %s484_s9, %s472_s27  }
  0xbb PF: > { %s498_s18 = sand.u32 1, %s827_s21   ;;  %p1064_p12 = scmp.ne.s32.totalorder %s1062_s12, 0 }
  0xbc   : > { %p1065_p0 = scmp.ge.s32.totalorder %s847_s26, 2  ;;  %s499_s19 = scalar_lea.sflag [#allocation6], %s498_s18 }
  0xbe   : > { %p678_p1 = pnand %p1065_p0, %p1064_p12 }
  0xc0   : > { %p679_p2 = pneg %p678_p1 }
  0xc2   : > { %822 = dma.done.wait (%p679_p2), %s499_s19, 128  }
  0xc3   : > { %824 = vsyncadd (%p679_p2), %s499_s19, 4294967168  ;;  %s22_s26 = sadd.s32 1, %s847_s26   ;;  %s1066_s21 = smov %s831_s22 }
  0xc4   : > { %p19_p3 = scmp.ge.s32.totalorder %s22_s26, 4   ;;  %s1067_s22 = smov %s835_s23 }
  0xc5   : > { %s1068_s23 = smov %s942_s11  ;;  %s1069_s24 = smov %s843_s25 }
  0xc6   : > { %s1070_s25 = smov %s1072_s29  ;;  %21 = sbr.rel (!%p19_p3) target bundleno = 6 (0x6), region = 122 }
  0xcb   :  { %504 = vsyncpa [#allocation5], 1 }
  0xcc   :  { %506 = vsyncpa [#allocation5 + $0x1], 1 }
  0xcd   :  { %507 = vsyncpa [#allocation6], 1 }
  0xce   :  { %509 = vsyncpa [#allocation6 + $0x1], 1 }

</bundles_post_ra>
